<compile_context>
chip_gen: v7x
topology: tpu7x:2x2x1
jax: 0.10.0
libtpu: 0.0.40
codegen_flags: <defaults>
</compile_context>

<pallas_src>
import functools

import jax
import jax.numpy as jnp
from jax.experimental import pallas as pl
from jax.experimental.pallas import tpu as pltpu


def fused_conv_kernel(g_ref, wb_ref, out_ref, *, ow):
    # g_ref  : (6, (OH+1)*OW) f32, g[(ki%2)*3 + kj, a*OW + j] = x_pad[2a + ki%2, 2j + kj]
    # wb_ref : (8, 10) f32, [:, :9] = 2*(w1+w2) taps in ki*3+kj order, [:, 9] = 2*(b1+b2)
    # out_ref: (8, OH*OW) f32, out[c, i*OW + j]   (lane-dense, P = OH*OW = 1024)
    n_out, p = out_ref.shape
    wb = wb_ref[...]                                           # (8, 10)

    # Bias (already 2x-scaled) folded into the accumulator init.
    acc = jnp.broadcast_to(wb[:, 9:10], (n_out, p))            # (8, P)

    # 9 VPU broadcast multiply-accumulates; each tap is a contiguous lane slice.
    for ki in range(3):
        row_base = (ki % 2) * 3
        off = (ki // 2) * ow                                   # 0 or OW
        for kj in range(3):
            tap = g_ref[pl.ds(row_base + kj, 1), pl.ds(off, p)]        # (1, P)
            w_col = wb[:, ki * 3 + kj:ki * 3 + kj + 1]                  # (8, 1)
            acc = acc + w_col * tap                                     # -> (8, P)

    # relu(v)+relu(v) == relu(2v); the 2x already lives in wb.
    out_ref[...] = jnp.maximum(acc, 0.0)


def model_forward(x1, w1, b1, w2, b2):
    """x1: (1,1,H,W) f32; w: (8,1,3,3); b: (8,). Returns (1,8,H//2,W//2)."""
    x_2d = x1[0, 0]                                            # N=1, C_in=1
    H, W = x_2d.shape
    OH, OW = H // 2, W // 2

    # Pad + parity split (single reshape/transpose): parity[pi,pj,a,b] = x_pad[2a+pi, 2b+pj]
    x_pad = jnp.pad(x_2d, ((1, 1), (1, 1)))                               # (H+2, W+2)
    parity = x_pad.reshape(OH + 1, 2, OW + 1, 2).transpose(1, 3, 0, 2)    # (2,2,OH+1,OW+1)

    # 6 shifted planes, pre-flattened so each conv tap is a contiguous lane slice:
    #   g[pi*3 + kj, a*OW + j] = x_pad[2a + pi, 2j + kj]
    g = jnp.stack([parity[:, 0, :, 0:OW],            # kj = 0
                   parity[:, 1, :, 0:OW],            # kj = 1
                   parity[:, 0, :, 1:OW + 1]],       # kj = 2
                  axis=1).reshape(6, (OH + 1) * OW)                       # (6, 1056)

    # Fold conv1+conv2 and the final 2x into one packed weight+bias matrix.
    wb = jnp.concatenate([2.0 * (w1 + w2).reshape(8, 9),
                          2.0 * (b1 + b2).reshape(8, 1)], axis=1)         # (8, 10)

    out_flat = pl.pallas_call(
        functools.partial(fused_conv_kernel, ow=OW),
        out_shape=jax.ShapeDtypeStruct((8, OH * OW), jnp.float32),
        in_specs=[pl.BlockSpec(memory_space=pltpu.MemorySpace.VMEM),
                  pl.BlockSpec(memory_space=pltpu.MemorySpace.VMEM)],
        out_specs=pl.BlockSpec(memory_space=pltpu.MemorySpace.VMEM),
        cost_estimate=pl.CostEstimate(
            flops=2 * 8 * 9 * OH * OW,
            bytes_accessed=(6 * (OH + 1) * OW + 8 * 10 + 8 * OH * OW) * 4,
            transcendentals=0),
    )(g, wb)                                                              # (8, OH*OW)

    # Row-major (8, OH*OW) -> (1, 8, OH, OW): metadata-only reshape, no transpose.
    return out_flat.reshape(1, 8, OH, OW)


def reference_forward(x1, w1, b1, w2, b2):
    """Pure-JAX reference matching the PyTorch forward exactly."""
    dn = jax.lax.conv_dimension_numbers(x1.shape, w1.shape, ("NCHW", "OIHW", "NCHW"))

    def conv(x, w, b):
        y = jax.lax.conv_general_dilated(
            x, w, window_strides=(2, 2), padding=((1, 1), (1, 1)),
            dimension_numbers=dn)
        return y + b.reshape(1, -1, 1, 1)

    v1 = conv(x1, w1, b1)
    v2 = conv(x1, w1, b1)
    v3 = conv(x1, w2, b2)
    v4 = conv(x1, w2, b2)
    v6 = jnp.maximum(v1 + v4, 0.0)
    v8 = jnp.maximum(v2 + v3, 0.0)
    return v6 + v8


if __name__ == "__main__":
    key = jax.random.PRNGKey(0)
    k_x, k_w1, k_b1, k_w2, k_b2 = jax.random.split(key, 5)

    x1 = jax.random.normal(k_x, (1, 1, 64, 64), dtype=jnp.float32)
    w1 = jax.random.normal(k_w1, (8, 1, 3, 3), dtype=jnp.float32) * 0.1
    b1 = jax.random.normal(k_b1, (8,), dtype=jnp.float32) * 0.1
    w2 = jax.random.normal(k_w2, (8, 1, 3, 3), dtype=jnp.float32) * 0.1
    b2 = jax.random.normal(k_b2, (8,), dtype=jnp.float32) * 0.1

    out = jax.jit(model_forward)(x1, w1, b1, w2, b2)
    out = jax.block_until_ready(out)

    ref = reference_forward(x1, w1, b1, w2, b2)
    assert out.shape == (1, 8, 32, 32), out.shape
    assert jnp.allclose(out, ref, atol=1e-4, rtol=1e-4), float(jnp.max(jnp.abs(out - ref)))

    print("KERNEL_OK")
</pallas_src>

<mosaic_0001>
module attributes {stable_mosaic.version = 11 : i64} {
  func.func @fused_conv_kernel(%arg0: memref<6x1056xf32, #tpu.memory_space<vmem>>, %arg1: memref<8x10xf32, #tpu.memory_space<vmem>>, %arg2: memref<8x1024xf32, #tpu.memory_space<vmem>>) attributes {dimension_semantics = [], scalar_prefetch = 0 : i64, scratch_operands = 0 : i64, tpu.core_type = #tpu.core_type<tc>} {
    %c0 = arith.constant 0 : index
    %c0_0 = arith.constant 0 : index
    %0 = vector.load %arg1[%c0, %c0_0] : memref<8x10xf32, #tpu.memory_space<vmem>>, vector<8x10xf32>
    %1 = vector.extract_strided_slice %0 {offsets = [0, 9], sizes = [8, 1], strides = [1, 1]} : vector<8x10xf32> to vector<8x1xf32>
    %2 = vector.shape_cast %1 : vector<8x1xf32> to vector<8x1xf32>
    %3 = vector.broadcast %2 : vector<8x1xf32> to vector<8x1024xf32>
    %c0_1 = arith.constant 0 : index
    %c0_2 = arith.constant 0 : index
    %4 = vector.load %arg0[%c0_1, %c0_2] : memref<6x1056xf32, #tpu.memory_space<vmem>>, vector<1x1024xf32>
    %5 = vector.extract_strided_slice %0 {offsets = [0, 0], sizes = [8, 1], strides = [1, 1]} : vector<8x10xf32> to vector<8x1xf32>
    %6 = vector.broadcast %5 : vector<8x1xf32> to vector<8x1024xf32>
    %7 = vector.broadcast %4 : vector<1x1024xf32> to vector<8x1024xf32>
    %8 = arith.mulf %6, %7 : vector<8x1024xf32>
    %9 = arith.addf %3, %8 : vector<8x1024xf32>
    %c1 = arith.constant 1 : index
    %c0_3 = arith.constant 0 : index
    %10 = vector.load %arg0[%c1, %c0_3] : memref<6x1056xf32, #tpu.memory_space<vmem>>, vector<1x1024xf32>
    %11 = vector.extract_strided_slice %0 {offsets = [0, 1], sizes = [8, 1], strides = [1, 1]} : vector<8x10xf32> to vector<8x1xf32>
    %12 = vector.broadcast %11 : vector<8x1xf32> to vector<8x1024xf32>
    %13 = vector.broadcast %10 : vector<1x1024xf32> to vector<8x1024xf32>
    %14 = arith.mulf %12, %13 : vector<8x1024xf32>
    %15 = arith.addf %9, %14 : vector<8x1024xf32>
    %c2 = arith.constant 2 : index
    %c0_4 = arith.constant 0 : index
    %16 = vector.load %arg0[%c2, %c0_4] : memref<6x1056xf32, #tpu.memory_space<vmem>>, vector<1x1024xf32>
    %17 = vector.extract_strided_slice %0 {offsets = [0, 2], sizes = [8, 1], strides = [1, 1]} : vector<8x10xf32> to vector<8x1xf32>
    %18 = vector.broadcast %17 : vector<8x1xf32> to vector<8x1024xf32>
    %19 = vector.broadcast %16 : vector<1x1024xf32> to vector<8x1024xf32>
    %20 = arith.mulf %18, %19 : vector<8x1024xf32>
    %21 = arith.addf %15, %20 : vector<8x1024xf32>
    %c3 = arith.constant 3 : index
    %c0_5 = arith.constant 0 : index
    %22 = vector.load %arg0[%c3, %c0_5] : memref<6x1056xf32, #tpu.memory_space<vmem>>, vector<1x1024xf32>
    %23 = vector.extract_strided_slice %0 {offsets = [0, 3], sizes = [8, 1], strides = [1, 1]} : vector<8x10xf32> to vector<8x1xf32>
    %24 = vector.broadcast %23 : vector<8x1xf32> to vector<8x1024xf32>
    %25 = vector.broadcast %22 : vector<1x1024xf32> to vector<8x1024xf32>
    %26 = arith.mulf %24, %25 : vector<8x1024xf32>
    %27 = arith.addf %21, %26 : vector<8x1024xf32>
    %c4 = arith.constant 4 : index
    %c0_6 = arith.constant 0 : index
    %28 = vector.load %arg0[%c4, %c0_6] : memref<6x1056xf32, #tpu.memory_space<vmem>>, vector<1x1024xf32>
    %29 = vector.extract_strided_slice %0 {offsets = [0, 4], sizes = [8, 1], strides = [1, 1]} : vector<8x10xf32> to vector<8x1xf32>
    %30 = vector.broadcast %29 : vector<8x1xf32> to vector<8x1024xf32>
    %31 = vector.broadcast %28 : vector<1x1024xf32> to vector<8x1024xf32>
    %32 = arith.mulf %30, %31 : vector<8x1024xf32>
    %33 = arith.addf %27, %32 : vector<8x1024xf32>
    %c5 = arith.constant 5 : index
    %c0_7 = arith.constant 0 : index
    %34 = vector.load %arg0[%c5, %c0_7] : memref<6x1056xf32, #tpu.memory_space<vmem>>, vector<1x1024xf32>
    %35 = vector.extract_strided_slice %0 {offsets = [0, 5], sizes = [8, 1], strides = [1, 1]} : vector<8x10xf32> to vector<8x1xf32>
    %36 = vector.broadcast %35 : vector<8x1xf32> to vector<8x1024xf32>
    %37 = vector.broadcast %34 : vector<1x1024xf32> to vector<8x1024xf32>
    %38 = arith.mulf %36, %37 : vector<8x1024xf32>
    %39 = arith.addf %33, %38 : vector<8x1024xf32>
    %c0_8 = arith.constant 0 : index
    %c32 = arith.constant 32 : index
    %40 = vector.load %arg0[%c0_8, %c32] : memref<6x1056xf32, #tpu.memory_space<vmem>>, vector<1x1024xf32>
    %41 = vector.extract_strided_slice %0 {offsets = [0, 6], sizes = [8, 1], strides = [1, 1]} : vector<8x10xf32> to vector<8x1xf32>
    %42 = vector.broadcast %41 : vector<8x1xf32> to vector<8x1024xf32>
    %43 = vector.broadcast %40 : vector<1x1024xf32> to vector<8x1024xf32>
    %44 = arith.mulf %42, %43 : vector<8x1024xf32>
    %45 = arith.addf %39, %44 : vector<8x1024xf32>
    %c1_9 = arith.constant 1 : index
    %c32_10 = arith.constant 32 : index
    %46 = vector.load %arg0[%c1_9, %c32_10] : memref<6x1056xf32, #tpu.memory_space<vmem>>, vector<1x1024xf32>
    %47 = vector.extract_strided_slice %0 {offsets = [0, 7], sizes = [8, 1], strides = [1, 1]} : vector<8x10xf32> to vector<8x1xf32>
    %48 = vector.broadcast %47 : vector<8x1xf32> to vector<8x1024xf32>
    %49 = vector.broadcast %46 : vector<1x1024xf32> to vector<8x1024xf32>
    %50 = arith.mulf %48, %49 : vector<8x1024xf32>
    %51 = arith.addf %45, %50 : vector<8x1024xf32>
    %c2_11 = arith.constant 2 : index
    %c32_12 = arith.constant 32 : index
    %52 = vector.load %arg0[%c2_11, %c32_12] : memref<6x1056xf32, #tpu.memory_space<vmem>>, vector<1x1024xf32>
    %53 = vector.extract_strided_slice %0 {offsets = [0, 8], sizes = [8, 1], strides = [1, 1]} : vector<8x10xf32> to vector<8x1xf32>
    %54 = vector.broadcast %53 : vector<8x1xf32> to vector<8x1024xf32>
    %55 = vector.broadcast %52 : vector<1x1024xf32> to vector<8x1024xf32>
    %56 = arith.mulf %54, %55 : vector<8x1024xf32>
    %57 = arith.addf %51, %56 : vector<8x1024xf32>
    %cst = arith.constant 0.000000e+00 : f32
    %58 = vector.broadcast %cst : f32 to vector<8x1024xf32>
    %59 = arith.maximumf %57, %58 : vector<8x1024xf32>
    %c0_13 = arith.constant 0 : index
    %c0_14 = arith.constant 0 : index
    %60 = vector.load %arg2[%c0_13, %c0_14] : memref<8x1024xf32, #tpu.memory_space<vmem>>, vector<8x1024xf32>
    tpu.vector_store %arg2[%c0_13, %c0_14], %59 {strides = array<i32>} : memref<8x1024xf32, #tpu.memory_space<vmem>>, vector<8x1024xf32>,
    return
  }
}

</mosaic_0001>

<bundles_post_ra>
// kernel: model_forward.1
= control target key start
LH: loop header
LB: loop body
LE: loop exit
PB: predicated region body
PF: predicated region fallthrough
CT: control target
= control target key end

     0   :  { %v814_v0 = vmov 6   ;;  %v815_v2 = vmov 8   ;;  %v816_v3 = vmov 7   ;;  %v817_v4 = vmov 0   ;;  %s824_s14 = smov 96   ;;  %s1351_s1 = inlined_call_operand.vmem [shape: f32[8,10], index: 1, kind: input, shape index: {}]   ;;  %s1352_s0 = inlined_call_operand.vmem [shape: f32[6,1056], index: 0, kind: input, shape index: {}]   ;;  %s1353_s2 = inlined_call_operand.vmem [shape: f32[8,1024], index: 2, kind: output, shape index: {}]  }
   0x1   :  { %803 = vset.pattern.permute.xlu0 %v814_v0  ;;  %v11_v1 = vld [vmem:[%s1351_s1] sm:$0xff]  ;;  %805 = vset.pattern.permute.xlu1 %v815_v2  ;;  %v818_v5 = vmov 9   ;;  %v819_v6 = vmov 1   ;;  %v820_v7 = vmov 2   ;;  %v821_v8 = vmov 4  }
   0x2   :  { %412 = vperm.xlu0 %803, %v11_v1   ;;  %645 = vperm.xlu1 %805, %v11_v1   ;;  %v822_v9 = vmov 3   ;;  %v823_v10 = vmov 5   ;;  %v25_v11 = vlaneseq  ;;  %v406_v13 = vld [vmem:[%s1352_s0] ss:$8 sm:$0xf]  ;;  %vm498_vm0 = vcmask 785408  }
   0x3   :  { %v407_v14 = vld [vmem:[%s1352_s0] ss:$8 sm:$0xf0]  ;;  %v786_v31 = vld [vmem:[%s1352_s0 + $0x1] ss:$8 sm:$0xf] }
   0x4   :  { %v26_v12 = vshrl.u32 %v25_v11, 7  ;;  %v408_v16 = vor.u32 %v407_v14, %v406_v13  ;;  %v787_v32 = vld [vmem:[%s1352_s0 + $0x1] ss:$8 sm:$0xf0] }
   0x5   :  { %v525_v37 = vor.u32 %v787_v32, %v786_v31  ;;  %v785_v42 = vld [vmem:[%s1352_s0 + $0x40] ss:$8 sm:$0x1]  ;;  %v789_v56 = vld [vmem:[%s1352_s0 + $0x2] ss:$8 sm:$0xf] }
   0x6   :  { %804 = vset.pattern.permute.xlu0 %v816_v3  ;;  %806 = vset.pattern.permute.xlu1 %v817_v4  ;;  %v849_v15 = vsub.s32 1, %v26_v12  ;;  %v851_v17 = vsub.s32 0, %v26_v12  ;;  %v855_v20 = vsub.s32 3, %v26_v12  ;;  %v857_v21 = vsub.s32 2, %v26_v12 }
   0x7   :  { %529 = vperm.xlu0 %804, %v11_v1   ;;  %21 = vperm.xlu1 %806, %v11_v1   ;;  %v859_v23 = vsub.s32 5, %v26_v12  ;;  %v861_v24 = vsub.s32 4, %v26_v12  ;;  %v867_v29 = vsub.s32 7, %v26_v12  ;;  %v869_v30 = vsub.s32 6, %v26_v12 }
   0x8   :  { %v424_v18 = vrot.slane %v408_v16, %v849_v15  ;;  %v420_v19 = vrot.slane %v408_v16, %v851_v17  ;;  %v432_v27 = vrot.slane %v408_v16, %v855_v20  ;;  %v428_v28 = vrot.slane %v408_v16, %v857_v21  ;;  %v790_v57 = vld [vmem:[%s1352_s0 + $0x2] ss:$8 sm:$0xf0]  ;;  %v788_v62 = vld [vmem:[%s1352_s0 + $0x41] ss:$8 sm:$0x1] }
   0x9   :  { %v440_v35 = vrot.slane %v408_v16, %v859_v23  ;;  %v436_v36 = vrot.slane %v408_v16, %v861_v24  ;;  %v448_v40 = vrot.slane %v408_v16, %v867_v29  ;;  %v444_v41 = vrot.slane %v408_v16, %v869_v30 }
   0xa   :  { %v537_v43 = vrot.slane %v525_v37, %v851_v17  ;;  %v452_v47 = vrot.slane %v785_v42, %v851_v17  ;;  %v545_v49 = vrot.slane %v525_v37, %v857_v21  ;;  %v541_v50 = vrot.slane %v525_v37, %v849_v15  ;;  %v776_v42 = vld [vmem:[%s1352_s0 + $0x1] ss:$8 sm:$0xf0] }
   0xb   :  { %807 = vset.pattern.permute.xlu1 %v818_v5  ;;  %808 = vset.pattern.permute.xlu0 %v819_v6  ;;  %v553_v54 = vrot.slane %v525_v37, %v861_v24  ;;  %v549_v55 = vrot.slane %v525_v37, %v855_v20  ;;  %v561_v60 = vrot.slane %v525_v37, %v869_v30 }
   0xc   :  { %14 = vperm.xlu1 %807, %v11_v1   ;;  %86 = vperm.xlu0 %808, %v11_v1   ;;  %v557_v61 = vrot.slane %v525_v37, %v859_v23  ;;  %v641_v63 = vor.u32 %v790_v57, %v789_v56  ;;  %v565_v3 = vrot.slane %v525_v37, %v867_v29  ;;  %v781_v56 = vld [vmem:[%s1352_s0 + $0x4] ss:$8 sm:$0xf] }
   0xd   :  { %v782_v57 = vld [vmem:[%s1352_s0 + $0x4] ss:$8 sm:$0xf0] }
   0xe   :  { %v657_v4 = vrot.slane %v641_v63, %v849_v15  ;;  %v653_v5 = vrot.slane %v641_v63, %v851_v17  ;;  %v665_v11 = vrot.slane %v641_v63, %v855_v20  ;;  %v661_v12 = vrot.slane %v641_v63, %v857_v21 }
   0xf   :  { %v673_v16 = vrot.slane %v641_v63, %v859_v23 }
  0x10   :  { %809 = vset.pattern.permute.xlu1 %v820_v7  ;;  %811 = vset.pattern.permute.xlu0 %v821_v8 }
  0x11   :  { %151 = vperm.xlu1 %809, %v11_v1   ;;  %281 = vperm.xlu0 %811, %v11_v1  }
  0x15   :  { %810 = vset.pattern.permute.xlu1 %v822_v9  ;;  %813 = vset.pattern.permute.xlu0 %v815_v2  ;;  %v569_v2 = vrot.slane %v788_v62, %v851_v17 }
  0x16   :  { %216 = vperm.xlu1 %810, %v11_v1  }
  0x1a   :  { %812 = vset.pattern.permute.xlu1 %v823_v10 }
  0x1b   :  { %346 = vperm.xlu1 %812, %v11_v1  }
  0x81   :  { %v413_v22 = vpop.permute.xlu0 %412  ;;  %v646_v6 = vpop.permute.xlu1 %645 }
  0x82   :  { %v463_v25 = vmul.f32 %v424_v18, %v413_v22  ;;  %v462_v26 = vmul.f32 %v420_v19, %v413_v22  ;;  %v465_v33 = vmul.f32 %v432_v27, %v413_v22  ;;  %v464_v34 = vmul.f32 %v428_v28, %v413_v22  ;;  %v791_v27 = vld [vmem:[%s1352_s0 + $0x42] ss:$8 sm:$0x1] }
  0x83   :  { %v467_v38 = vmul.f32 %v440_v35, %v413_v22  ;;  %v466_v39 = vmul.f32 %v436_v36, %v413_v22  ;;  %v469_v45 = vmul.f32 %v448_v40, %v413_v22  ;;  %v468_v46 = vmul.f32 %v444_v41, %v413_v22  ;;  %v18_v40 = vld [vmem:[%s1352_s0] ss:$8 sm:$0xf0]  ;;  %v775_v41 = vld [vmem:[%s1352_s0 + $0x1] ss:$8 sm:$0xf] }
  0x84   :  { %482 = vrot.lane.b32.xlu0 %v463_v25, %s824_s14  ;;  %480 = vrot.lane.b32.xlu1 %v462_v26, %s824_s14  ;;  %v470_v51 = vmul.f32 %v452_v47, %v413_v22  ;;  %v696_v9 = vmul.f32 %v657_v4, %v646_v6  ;;  %v695_v10 = vmul.f32 %v653_v5, %v646_v6  ;;  %v778_v47 = vld [vmem:[%s1352_s0 + $0x2] ss:$8 sm:$0xf0] }
  0x85   :  { %v698_v13 = vmul.f32 %v665_v11, %v646_v6  ;;  %v697_v14 = vmul.f32 %v661_v12, %v646_v6  ;;  %v669_v18 = vrot.slane %v641_v63, %v861_v24  ;;  %v700_v19 = vmul.f32 %v673_v16, %v646_v6 }
  0x86   :  { %v530_v44 = vpop.permute.xlu0 %529  ;;  %v681_v25 = vrot.slane %v641_v63, %v867_v29  ;;  %v677_v26 = vrot.slane %v641_v63, %v869_v30  ;;  %v685_v32 = vrot.slane %v791_v27, %v851_v17 }
  0x87   :  { %v579_v48 = vmul.f32 %v537_v43, %v530_v44  ;;  %v581_v52 = vmul.f32 %v545_v49, %v530_v44  ;;  %v580_v53 = vmul.f32 %v541_v50, %v530_v44  ;;  %v583_v58 = vmul.f32 %v553_v54, %v530_v44  ;;  %v779_v49 = vld [vmem:[%s1352_s0 + $0x3] ss:$8 sm:$0xf] }
  0x88   :  { %486 = vrot.lane.b32.xlu0 %v465_v33, %s824_s14  ;;  %484 = vrot.lane.b32.xlu1 %v464_v34, %s824_s14  ;;  %v582_v59 = vmul.f32 %v549_v55, %v530_v44  ;;  %v585_v0 = vmul.f32 %v561_v60, %v530_v44  ;;  %v584_v1 = vmul.f32 %v557_v61, %v530_v44  ;;  %v940_v34 = vpop.permute.xlu1 %21  ;;  %v780_v50 = vld [vmem:[%s1352_s0 + $0x3] ss:$8 sm:$0xf0] }
  0x89   :  { %v587_v7 = vmul.f32 %v569_v2, %v530_v44  ;;  %v586_v8 = vmul.f32 %v565_v3, %v530_v44  ;;  %v699_v22 = vmul.f32 %v669_v18, %v646_v6  ;;  %v702_v28 = vmul.f32 %v681_v25, %v646_v6 }
  0x8a   :  { %v701_v31 = vmul.f32 %v677_v26, %v646_v6  ;;  %v703_v33 = vmul.f32 %v685_v32, %v646_v6  ;;  %v1008_v63 = vor.u32 %v780_v50, %v779_v49 }
  0x8c   :  { %490 = vrot.lane.b32.xlu0 %v467_v38, %s824_s14  ;;  %488 = vrot.lane.b32.xlu1 %v466_v39, %s824_s14  ;;  %v942_v35 = vpop.permute.xlu1 %14  ;;  %v948_v38 = vpop.permute.xlu0 %86  ;;  %v17_v39 = vld [vmem:[%s1352_s0] ss:$8 sm:$0xf]  ;;  %v227_v25 = vrot.slane %v1008_v63, %v849_v15  ;;  %v231_v26 = vrot.slane %v1008_v63, %v857_v21 }
  0x90   :  { %494 = vrot.lane.b32.xlu0 %v469_v45, %s824_s14  ;;  %492 = vrot.lane.b32.xlu1 %v468_v46, %s824_s14  ;;  %v944_v36 = vpop.permute.xlu1 %151  ;;  %v962_v43 = vpop.permute.xlu0 %281  ;;  %v966_v45 = vor.u32 %v18_v40, %v17_v39  ;;  %v777_v46 = vld [vmem:[%s1352_s0 + $0x2] ss:$8 sm:$0xf] }
  0x91   :  { %v988_v54 = vor.u32 %v778_v47, %v777_v46 }
  0x92   :  { %v32_v55 = vrot.slane %v966_v45, %v849_v15  ;;  %v44_v60 = vrot.slane %v966_v45, %v861_v24  ;;  %v48_v61 = vrot.slane %v966_v45, %v859_v23 }
  0x93   :  { %v158_v6 = vrot.slane %v988_v54, %v851_v17  ;;  %v162_v12 = vrot.slane %v988_v54, %v849_v15  ;;  %v170_v16 = vrot.slane %v988_v54, %v855_v20  ;;  %v174_v18 = vrot.slane %v988_v54, %v861_v24 }
  0x94   :  { %597 = vrot.lane.b32.xlu0 %v579_v48, %s824_s14  ;;  %496 = vrot.lane.b32.xlu1 %v470_v51, %s824_s14  ;;  %v974_v48 = vor.u32 %v776_v42, %v775_v41  ;;  %v66_v49 = vmul.f32 %v32_v55, %v940_v34  ;;  %v70_v27 = vmul.f32 %v48_v61, %v940_v34 }
  0x95   :  { %v946_v37 = vpop.permute.xlu1 %216  ;;  %v196_v40 = vmul.f32 %v162_v12, %v944_v36  ;;  %v251_v12 = vrot.slane %v1008_v63, %v867_v29 }
  0x96   :  { %v93_v62 = vrot.slane %v974_v48, %v851_v17  ;;  %v101_v2 = vrot.slane %v974_v48, %v857_v21  ;;  %v105_v3 = vrot.slane %v974_v48, %v855_v20  ;;  %v109_v4 = vrot.slane %v974_v48, %v861_v24 }
  0x97   :  { %v113_v5 = vrot.slane %v974_v48, %v859_v23 }
  0x98   :  { %601 = vrot.lane.b32.xlu0 %v581_v52, %s824_s14  ;;  %599 = vrot.lane.b32.xlu1 %v580_v53, %s824_s14  ;;  %v28_v53 = vrot.slane %v966_v45, %v851_v17  ;;  %v134_v47 = vmul.f32 %v109_v4, %v948_v38 }
  0x99   :  { %v135_v32 = vmul.f32 %v113_v5, %v948_v38 }
  0x9a   :  { %v964_v44 = vpop.permute.xlu1 %346  ;;  %v65_v39 = vmul.f32 %v28_v53, %v940_v34 }
  0x9c   :  { %605 = vrot.lane.b32.xlu0 %v583_v58, %s824_s14  ;;  %603 = vrot.lane.b32.xlu1 %v582_v59, %s824_s14  ;;  %v36_v58 = vrot.slane %v966_v45, %v857_v21  ;;  %v40_v59 = vrot.slane %v966_v45, %v855_v20 }
  0x9e   :  { %v67_v50 = vmul.f32 %v36_v58, %v940_v34  ;;  %v74_v58 = vadd.f32 %v66_v49, %v942_v35 }
  0xa0   :  { %609 = vrot.lane.b32.xlu0 %v585_v0, %s824_s14  ;;  %607 = vrot.lane.b32.xlu1 %v584_v1, %s824_s14  ;;  %v97_v0 = vrot.slane %v974_v48, %v849_v15  ;;  %v52_v1 = vrot.slane %v966_v45, %v869_v30 }
  0xa4   :  { %613 = vrot.lane.b32.xlu0 %v587_v7, %s824_s14  ;;  %611 = vrot.lane.b32.xlu1 %v586_v8, %s824_s14  ;;  %v1024_v7 = vor.u32 %v782_v57, %v781_v56  ;;  %v783_v8 = vld [vmem:[%s1352_s0 + $0x5] ss:$8 sm:$0xf]  ;;  %v68_v57 = vmul.f32 %v40_v59, %v940_v34  ;;  %v130_v56 = vmul.f32 %v93_v62, %v948_v38 }
  0xa5   :  { %v131_v59 = vmul.f32 %v97_v0, %v948_v38  ;;  %v56_v0 = vrot.slane %v966_v45, %v867_v29  ;;  %v199_v45 = vmul.f32 %v174_v18, %v944_v36 }
  0xa6   :  { %v76_v62 = vadd.f32 %v68_v57, %v942_v35  ;;  %v121_v57 = vrot.slane %v974_v48, %v867_v29 }
  0xa8   :  { %715 = vrot.lane.b32.xlu0 %v696_v9, %s824_s14  ;;  %713 = vrot.lane.b32.xlu1 %v695_v10, %s824_s14  ;;  %v784_v9 = vld [vmem:[%s1352_s0 + $0x5] ss:$8 sm:$0xf0] }
  0xac   :  { %719 = vrot.lane.b32.xlu0 %v698_v13, %s824_s14  ;;  %717 = vrot.lane.b32.xlu1 %v697_v14, %s824_s14  ;;  %v117_v13 = vrot.slane %v974_v48, %v869_v30  ;;  %v166_v14 = vrot.slane %v988_v54, %v857_v21 }
  0xb0   :  { %723 = vrot.lane.b32.xlu0 %v700_v19, %s824_s14  ;;  %721 = vrot.lane.b32.xlu1 %v699_v22, %s824_s14  ;;  %v223_v22 = vrot.slane %v1008_v63, %v851_v17  ;;  %v198_v19 = vmul.f32 %v170_v16, %v944_v36 }
  0xb2   :  { %v260_v16 = vmul.f32 %v223_v22, %v946_v37  ;;  %v262_v22 = vmul.f32 %v231_v26, %v946_v37 }
  0xb4   :  { %727 = vrot.lane.b32.xlu0 %v702_v28, %s824_s14  ;;  %725 = vrot.lane.b32.xlu1 %v701_v31, %s824_s14  ;;  %v1056_v28 = vor.u32 %v784_v9, %v783_v8  ;;  %v235_v31 = vrot.slane %v1008_v63, %v855_v20  ;;  %v69_v8 = vmul.f32 %v44_v60, %v940_v34 }
  0xb5   :  { %v73_v60 = vadd.f32 %v65_v39, %v942_v35  ;;  %v132_v39 = vmul.f32 %v101_v2, %v948_v38  ;;  %v133_v9 = vmul.f32 %v105_v3, %v948_v38  ;;  %v71_v3 = vmul.f32 %v52_v1, %v940_v34 }
  0xb6   :  { %v77_v41 = vadd.f32 %v69_v8, %v942_v35  ;;  %v139_v8 = vadd.f32 %v131_v59, %v74_v58  ;;  %v78_v1 = vadd.f32 %v70_v27, %v942_v35  ;;  %v136_v27 = vmul.f32 %v117_v13, %v948_v38 }
  0xb7   :  { %v138_v2 = vadd.f32 %v130_v56, %v73_v60  ;;  %v197_v56 = vmul.f32 %v166_v14, %v944_v36  ;;  %v141_v60 = vadd.f32 %v133_v9, %v76_v62  ;;  %v79_v18 = vadd.f32 %v71_v3, %v942_v35 }
  0xb8   :  { %729 = vrot.lane.b32.xlu1 %v703_v33, %s824_s14  ;;  %v75_v33 = vadd.f32 %v67_v50, %v942_v35  ;;  %v195_v50 = vmul.f32 %v158_v6, %v944_v36  ;;  %v142_v6 = vadd.f32 %v134_v47, %v77_v41  ;;  %v204_v47 = vadd.f32 %v196_v40, %v139_v8 }
  0xb9   :  { %v261_v58 = vmul.f32 %v227_v25, %v946_v37  ;;  %v206_v59 = vadd.f32 %v198_v19, %v141_v60  ;;  %v263_v48 = vmul.f32 %v235_v31, %v946_v37  ;;  %v1354_v13 = vrot.slane %v1008_v63, %v861_v24 }
  0xba   :  { %v140_v49 = vadd.f32 %v132_v39, %v75_v33  ;;  %v186_v33 = vrot.slane %v988_v54, %v867_v29  ;;  %v203_v14 = vadd.f32 %v195_v50, %v138_v2  ;;  %v207_v39 = vadd.f32 %v199_v45, %v142_v6 }
  0xbb   :  { %v264_v40 = vmul.f32 %v1354_v13, %v946_v37  ;;  %v143_v62 = vadd.f32 %v135_v32, %v78_v1  ;;  %v1355_v25 = vrot.slane %v988_v54, %v859_v23  ;;  %v72_v19 = vmul.f32 %v56_v0, %v940_v34 }
  0xbc   :  { %v205_v9 = vadd.f32 %v197_v56, %v140_v49  ;;  %v268_v26 = vadd.f32 %v260_v16, %v203_v14  ;;  %v1356_v2 = vrot.slane %v1024_v7, %v851_v17  ;;  %v144_v50 = vadd.f32 %v136_v27, %v79_v18 }
  0xbd   :  { %v200_v49 = vmul.f32 %v1355_v25, %v944_v36  ;;  %v1357_v3 = vrot.slane %v988_v54, %v869_v30  ;;  %v269_v60 = vadd.f32 %v261_v58, %v204_v47  ;;  %v1358_v34 = vrot.slane %v1024_v7, %v849_v15 }
  0xbe   :  { %v325_v31 = vmul.f32 %v1356_v2, %v962_v43  ;;  %v270_v6 = vadd.f32 %v262_v22, %v205_v9  ;;  %v1359_v45 = vrot.slane %v1024_v7, %v857_v21  ;;  %v271_v14 = vadd.f32 %v263_v48, %v206_v59 }
  0xbf   :  { %v201_v8 = vmul.f32 %v1357_v3, %v944_v36  ;;  %v326_v0 = vmul.f32 %v1358_v34, %v962_v43  ;;  %v272_v16 = vadd.f32 %v264_v40, %v207_v39  ;;  %v1360_v54 = vrot.slane %v1024_v7, %v855_v20 }
  0xc0   :  { %v327_v1 = vmul.f32 %v1359_v45, %v962_v43  ;;  %v1361_v27 = vrot.slane %v1024_v7, %v861_v24  ;;  %v208_v9 = vadd.f32 %v200_v49, %v143_v62  ;;  %v1362_v58 = vrot.slane %v1008_v63, %v859_v23 }
  0xc1   :  { %v328_v18 = vmul.f32 %v1360_v54, %v962_v43  ;;  %v80_v13 = vadd.f32 %v72_v19, %v942_v35  ;;  %v137_v59 = vmul.f32 %v121_v57, %v948_v38  ;;  %v333_v39 = vadd.f32 %v325_v31, %v268_v26 }
  0xc2   :  { %v329_v47 = vmul.f32 %v1361_v27, %v962_v43  ;;  %v265_v22 = vmul.f32 %v1362_v58, %v946_v37  ;;  %v1363_v48 = vrot.slane %v1056_v28, %v851_v17  ;;  %v209_v25 = vadd.f32 %v201_v8, %v144_v50 }
  0xc3   :  { %v1364_v62 = vrot.slane %v1008_v63, %v869_v30  ;;  %v334_v34 = vadd.f32 %v326_v0, %v269_v60  ;;  %v335_v35 = vadd.f32 %v327_v1, %v270_v6  ;;  %v1365_v38 = vrot.slane %v1056_v28, %v849_v15 }
  0xc4   :  { %v390_v40 = vmul.f32 %v1363_v48, %v964_v44  ;;  %v1366_v17 = vrot.slane %v1056_v28, %v857_v21  ;;  %v336_v26 = vadd.f32 %v328_v18, %v271_v14  ;;  %v337_v31 = vadd.f32 %v329_v47, %v272_v16 }
  0xc5   :  { %v266_v49 = vmul.f32 %v1364_v62, %v946_v37  ;;  %v391_v57 = vmul.f32 %v1365_v38, %v964_v44  ;;  %v1367_v50 = vrot.slane %v1056_v28, %v855_v20  ;;  %v1368_v60 = vrot.slane %v1056_v28, %v861_v24 }
  0xc6   :  { %v392_v19 = vmul.f32 %v1366_v17, %v964_v44  ;;  %v145_v0 = vadd.f32 %v137_v59, %v80_v13  ;;  %v202_v21 = vmul.f32 %v186_v33, %v944_v36  ;;  %v316_v45 = vrot.slane %v1024_v7, %v867_v29 }
  0xc7   :  { %v393_v8 = vmul.f32 %v1367_v50, %v964_v44  ;;  %v394_v6 = vmul.f32 %v1368_v60, %v964_v44  ;;  %v398_v1 = vadd.f32 %v390_v40, %v333_v39  ;;  %v273_v14 = vadd.f32 %v265_v22, %v208_v9 }
  0xc8   :  { %v1369_v20 = vrot.slane %v1024_v7, %v859_v23  ;;  %v381_v24 = vrot.slane %v1056_v28, %v867_v29  ;;  %v274_v27 = vadd.f32 %v266_v49, %v209_v25  ;;  %v1370_v36 = vrot.slane %v1024_v7, %v869_v30 }
  0xc9   :  { %v400_v58 = vadd.f32 %v392_v19, %v335_v35  ;;  %v401_v22 = vadd.f32 %v393_v8, %v336_v26  ;;  %v402_v13 = vadd.f32 %v394_v6, %v337_v31  ;;  %v210_v48 = vadd.f32 %v202_v21, %v145_v0 }
  0xca   :  { %v330_v16 = vmul.f32 %v1369_v20, %v962_v43  ;;  %v331_v33 = vmul.f32 %v1370_v36, %v962_v43  ;;  %v267_v7 = vmul.f32 %v251_v12, %v946_v37  ;;  %v332_v38 = vmul.f32 %v316_v45, %v962_v43 }
  0xcb   :  { %v397_v17 = vmul.f32 %v381_v24, %v964_v44 }
  0xcc   :  { %v338_v40 = vadd.f32 %v330_v16, %v273_v14  ;;  %v339_v35 = vadd.f32 %v331_v33, %v274_v27 }
  0xf6   :  { %v982_v51 = vpop.permute.xlu0 %482  ;;  %v984_v52 = vpop.permute.xlu1 %480 }
  0xf7   :  { %v499_v15 = vsel %vm498_vm0, %v984_v52, %v982_v51  ;;  %v399_v52 = vadd.f32 %v391_v57, %v334_v34 }
  0xf8   :  { %v515_v9 = vadd.f32 %v499_v15, %v398_v1 }
  0xfa   :  { %v1032_v10 = vpop.permute.xlu0 %486  ;;  %v1034_v11 = vpop.permute.xlu1 %484 }
  0xfb   :  { %v500_v59 = vsel %vm498_vm0, %v982_v51, %v1034_v11  ;;  %v501_v39 = vsel %vm498_vm0, %v1034_v11, %v1032_v10  ;;  %v1372_v51 = vrot.slane %v1056_v28, %v869_v30 }
  0xfc   :  { %v516_v63 = vadd.f32 %v500_v59, %v399_v52  ;;  %v517_v12 = vadd.f32 %v501_v39, %v400_v58 }
  0xfd   :  { %v396_v62 = vmul.f32 %v1372_v51, %v964_v44 }
  0xfe   :  { %v1069_v42 = vpop.permute.xlu0 %490  ;;  %v1071_v46 = vpop.permute.xlu1 %488 }
  0xff   :  { %v503_v57 = vsel %vm498_vm0, %v1071_v46, %v1069_v42  ;;  %v404_v21 = vadd.f32 %v396_v62, %v339_v35 }
 0x102   :  { %v1101_v55 = vpop.permute.xlu0 %494  ;;  %v1103_v53 = vpop.permute.xlu1 %492 }
 0x106   :  { %v1125_v4 = vpop.permute.xlu0 %597  ;;  %v1127_v61 = vpop.permute.xlu1 %496 }
 0x10a   :  { %v1153_v5 = vpop.permute.xlu0 %601  ;;  %v1155_v41 = vpop.permute.xlu1 %599 }
 0x10b   :  { %v615_v47 = vsel %vm498_vm0, %v1125_v4, %v1155_v41  ;;  %v1371_v4 = vrot.slane %v1056_v28, %v859_v23  ;;  %v616_v29 = vsel %vm498_vm0, %v1155_v41, %v1153_v5  ;;  %v502_v28 = vsel %vm498_vm0, %v1032_v10, %v1071_v46 }
 0x10c   :  { %v631_v49 = vadd.f32 %v615_v47, %v515_v9  ;;  %v275_v41 = vadd.f32 %v267_v7, %v210_v48  ;;  %v518_v6 = vadd.f32 %v502_v28, %v401_v22 }
 0x10d   :  { %v395_v25 = vmul.f32 %v1371_v4, %v964_v44  ;;  %v519_v44 = vadd.f32 %v503_v57, %v402_v13 }
 0x10e   :  { %v1186_v32 = vpop.permute.xlu0 %605  ;;  %v1188_v56 = vpop.permute.xlu1 %603  ;;  %v340_v45 = vadd.f32 %v332_v38, %v275_v41 }
 0x10f   :  { %v617_v37 = vsel %vm498_vm0, %v1153_v5, %v1188_v56  ;;  %v403_v19 = vadd.f32 %v395_v25, %v338_v40  ;;  %v632_v5 = vadd.f32 %v616_v29, %v516_v63  ;;  %v618_v43 = vsel %vm498_vm0, %v1188_v56, %v1186_v32 }
 0x110   :  { %v633_v26 = vadd.f32 %v617_v37, %v517_v12  ;;  %v504_v56 = vsel %vm498_vm0, %v1069_v42, %v1103_v53  ;;  %v634_v1 = vadd.f32 %v618_v43, %v518_v6  ;;  %v405_v58 = vadd.f32 %v397_v17, %v340_v45 }
 0x112   :  { %v1220_v2 = vpop.permute.xlu0 %609  ;;  %v1222_v3 = vpop.permute.xlu1 %607 }
 0x113   :  { %v619_v10 = vsel %vm498_vm0, %v1186_v32, %v1222_v3  ;;  %v505_v32 = vsel %vm498_vm0, %v1103_v53, %v1101_v55  ;;  %v620_v27 = vsel %vm498_vm0, %v1222_v3, %v1220_v2  ;;  %v520_v53 = vadd.f32 %v504_v56, %v403_v19 }
 0x114   :  { %v635_v14 = vadd.f32 %v619_v10, %v519_v44  ;;  %v521_v47 = vadd.f32 %v505_v32, %v404_v21 }
 0x115   :  { %v636_v22 = vadd.f32 %v620_v27, %v520_v53 }
 0x116   :  { %v1252_v54 = vpop.permute.xlu0 %613  ;;  %v1254_v18 = vpop.permute.xlu1 %611 }
 0x117   :  { %v621_v36 = vsel %vm498_vm0, %v1220_v2, %v1254_v18  ;;  %v506_v2 = vsel %vm498_vm0, %v1101_v55, %v1127_v61  ;;  %v622_v40 = vsel %vm498_vm0, %v1254_v18, %v1252_v54 }
 0x118   :  { %v637_v13 = vadd.f32 %v621_v36, %v521_v47  ;;  %v522_v51 = vadd.f32 %v506_v2, %v405_v58 }
 0x11a   :  { %v716_v34 = vpop.permute.xlu0 %715  ;;  %v714_v11 = vpop.permute.xlu1 %713  ;;  %v638_v62 = vadd.f32 %v622_v40, %v522_v51 }
 0x11b   :  { %v731_v23 = vsel %vm498_vm0, %v714_v11, %v716_v34 }
 0x11c   :  { %v747_v30 = vadd.f32 %v731_v23, %v631_v49 }
 0x11e   :  { %v755_v31 = vmax.f32 %v747_v30, 0.0  ;;  %v720_v50 = vpop.permute.xlu0 %719  ;;  %v718_v8 = vpop.permute.xlu1 %717 }
 0x11f   :  { %v732_v60 = vsel %vm498_vm0, %v716_v34, %v718_v8  ;;  %v733_v46 = vsel %vm498_vm0, %v718_v8, %v720_v50 }
 0x120   :  { %763 = vst [vmem:[%s1353_s2] sm:$0xff] %v755_v31  ;;  %v748_v15 = vadd.f32 %v732_v60, %v632_v5  ;;  %v749_v0 = vadd.f32 %v733_v46, %v633_v26 }
 0x122   :  { %v756_v20 = vmax.f32 %v748_v15, 0.0  ;;  %v757_v16 = vmax.f32 %v749_v0, 0.0  ;;  %v724_v24 = vpop.permute.xlu0 %723  ;;  %v722_v52 = vpop.permute.xlu1 %721 }
 0x123   :  { %v734_v42 = vsel %vm498_vm0, %v720_v50, %v722_v52  ;;  %v735_v33 = vsel %vm498_vm0, %v722_v52, %v724_v24 }
 0x124   :  { %764 = vst [vmem:[%s1353_s2 + $0x8] sm:$0xff] %v756_v20  ;;  %765 = vst [vmem:[%s1353_s2 + $0x10] sm:$0xff] %v757_v16  ;;  %v750_v9 = vadd.f32 %v734_v42, %v634_v1  ;;  %v751_v3 = vadd.f32 %v735_v33, %v635_v14 }
 0x126   :  { %v758_v59 = vmax.f32 %v750_v9, 0.0  ;;  %v759_v39 = vmax.f32 %v751_v3, 0.0  ;;  %v728_v48 = vpop.permute.xlu0 %727  ;;  %v726_v7 = vpop.permute.xlu1 %725 }
 0x127   :  { %v736_v4 = vsel %vm498_vm0, %v724_v24, %v726_v7  ;;  %v737_v25 = vsel %vm498_vm0, %v726_v7, %v728_v48 }
 0x128   :  { %766 = vst [vmem:[%s1353_s2 + $0x18] sm:$0xff] %v758_v59  ;;  %767 = vst [vmem:[%s1353_s2 + $0x20] sm:$0xff] %v759_v39  ;;  %v752_v55 = vadd.f32 %v736_v4, %v636_v22  ;;  %v753_v61 = vadd.f32 %v737_v25, %v637_v13 }
 0x12a   :  { %v760_v49 = vmax.f32 %v752_v55, 0.0  ;;  %v761_v34 = vmax.f32 %v753_v61, 0.0  ;;  %v730_v11 = vpop.permute.xlu1 %729 }
 0x12b   :  { %v738_v54 = vsel %vm498_vm0, %v728_v48, %v730_v11 }
 0x12c   :  { %768 = vst [vmem:[%s1353_s2 + $0x28] sm:$0xff] %v760_v49  ;;  %769 = vst [vmem:[%s1353_s2 + $0x30] sm:$0xff] %v761_v34  ;;  %v754_v18 = vadd.f32 %v738_v54, %v638_v62 }
 0x12e   :  { %v762_v35 = vmax.f32 %v754_v18, 0.0 }
 0x130   :  { %770 = vst [vmem:[%s1353_s2 + $0x38] sm:$0xff] %v762_v35 }

</bundles_post_ra>
